<compile_context>
chip_gen: v7x
topology: tpu7x:2x2x1
jax: 0.10.0
libtpu: 0.0.40
codegen_flags: <defaults>
</compile_context>

<pallas_src>
import functools

import jax
import jax.numpy as jnp
from jax import lax
from jax.experimental import pallas as pl
from jax.experimental.pallas import tpu as pltpu


def _ssl_loss_kernel(p_ref, y_ref, acc_ref, *, batch_size, block_rows, group_rows,
                     blocks_per_core, hard_labels):
    c = pl.program_id(0)   # core axis (CORE_PARALLEL when num_cores > 1)
    i = pl.program_id(1)   # reduction axis: row-blocks within this core's shard

    @pl.when(i == 0)
    def _():
        acc_ref[...] = jnp.zeros_like(acc_ref)

    d = acc_ref.shape[-1]
    n_groups = block_rows // group_rows
    # Logical (unclamped) first row of this block; padded steps land >= batch_size.
    row_start = (c * blocks_per_core + i) * block_rows

    def bce(p, y):
        p = p.astype(jnp.float32)
        y = y.astype(jnp.float32)
        if hard_labels:
            # y in {0,1}: identical value, one EUP log instead of two.
            return -jnp.log(jnp.where(y > 0.5, p, 1.0 - p))
        # General (possibly soft) labels, exactly matching the PyTorch module.
        return -y * jnp.log(p) - (1.0 - y) * jnp.log(1.0 - p)

    def group_sum(g, mask_rows):
        r0 = pl.multiple_of(g * group_rows, group_rows)
        term = bce(p_ref[pl.ds(r0, group_rows), :], y_ref[pl.ds(r0, group_rows), :])
        if mask_rows:
            # True select (not multiply) so garbage rows' NaN/Inf logs never
            # reach the sum.
            row_ids = row_start + r0 + lax.broadcasted_iota(jnp.int32, (group_rows, d), 0)
            term = jnp.where(row_ids < batch_size, term, 0.0)
        # Lane-dense fold: collapse only the row-group axis (pure VPU adds).
        return term.reshape(group_rows // 8, 8, d).sum(axis=0)

    # Fast path: block entirely inside the batch — no iota, no select.
    @pl.when(row_start + block_rows <= batch_size)
    def _():
        part = lax.fori_loop(0, n_groups,
                             lambda g, acc: acc + group_sum(g, False),
                             jnp.zeros((8, d), jnp.float32))
        acc_ref[...] += part

    # Tail path: ragged last block of a core (and fully padded steps).
    @pl.when(row_start + block_rows > batch_size)
    def _():
        part = lax.fori_loop(0, n_groups,
                             lambda g, acc: acc + group_sum(g, True),
                             jnp.zeros((8, d), jnp.float32))
        acc_ref[...] += part


def _round_up(x, m):
    return ((int(x) + m - 1) // m) * m


def ssl_loss(precedence, y, *, num_cores=1, hard_labels=False, vmem_budget_bytes=None):
    assert precedence.ndim == 2 and y.ndim == 2
    assert precedence.shape == y.shape
    B, D = precedence.shape

    p_is = jnp.dtype(precedence.dtype).itemsize
    y_is = jnp.dtype(y.dtype).itemsize
    # Sublane alignment for the narrowest input dtype (f32 -> 8, bf16 -> 16, i8 -> 32).
    row_align = max(8, 32 // min(p_is, y_is))

    # Generation-aware VMEM sizing: double-buffered input windows get ~1/4 of
    # physical VMEM; the scoped limit stays <= 3/4 so Mosaic internal scratch
    # and the output slabs always fit (v7x: 64 MiB physical per TC).
    try:
        vmem_cap = int(pltpu.get_tpu_info().vmem_capacity_bytes)
    except Exception:
        vmem_cap = 64 * 1024 * 1024   # conservative (v7x-sized) fallback
    if vmem_budget_bytes is None:
        vmem_budget_bytes = vmem_cap // 4

    # Largest batch tile keeping double-buffered input windows inside the budget.
    # TODO(synk): for very large D (or D not a multiple of 128), tile D as a
    # second arbitrary grid axis and mask padded lanes.
    bytes_per_row = 2 * D * (p_is + y_is)          # x2 pipeline buffers
    block_rows = max(row_align, vmem_budget_bytes // max(bytes_per_row, 1))
    block_rows = (block_rows // row_align) * row_align
    # Never taller than one core's (rounded-up) share of the batch.
    rows_per_core = _round_up(pl.cdiv(B, num_cores), row_align)
    block_rows = min(block_rows, rows_per_core)
    # In-kernel row groups: term is computed/folded <=512 rows at a time so the
    # full (block_rows, D) tensor is never materialized.
    group_rows = max(row_align, min(512, block_rows))
    block_rows = max(group_rows, (block_rows // group_rows) * group_rows)

    total_blocks = pl.cdiv(B, block_rows)
    blocks_per_core = pl.cdiv(total_blocks, num_cores)
    grid = (num_cores, blocks_per_core)

    def in_index(c, i):
        # Padded grid steps repeat the core's own last valid block index so the
        # pipeline skips their DMA entirely; their contribution is masked to
        # zero inside the kernel regardless.
        base = c * blocks_per_core
        last_in_core = jnp.maximum(
            jnp.minimum(total_blocks - 1 - base, blocks_per_core - 1), 0)
        return (jnp.minimum(base + jnp.minimum(i, last_in_core), total_blocks - 1), 0)

    win_bytes = 2 * block_rows * D * (p_is + y_is)
    vmem_limit_bytes = int(min(3 * vmem_cap // 4,
                               max(32 * 1024 * 1024, win_bytes + (8 << 20))))

    kernel = functools.partial(
        _ssl_loss_kernel,
        batch_size=B,
        block_rows=block_rows,
        group_rows=group_rows,
        blocks_per_core=blocks_per_core,
        hard_labels=hard_labels,
    )

    # num_cores > 1 is intended for v7x dual-TC chips; CORE_PARALLEL makes the
    # core split real (plain "parallel" often changes nothing).
    core_sem = pltpu.CORE_PARALLEL if num_cores > 1 else pltpu.ARBITRARY

    partials = pl.pallas_call(
        kernel,
        out_shape=jax.ShapeDtypeStruct((num_cores, 8, D), jnp.float32),
        grid_spec=pltpu.PrefetchScalarGridSpec(
            num_scalar_prefetch=0,
            grid=grid,
            in_specs=[
                pl.BlockSpec((block_rows, D), in_index),
                pl.BlockSpec((block_rows, D), in_index),
            ],
            # One lane-dense (8, D) partial-sum slab per core, resident across
            # the reduction axis.
            out_specs=pl.BlockSpec((None, 8, D), lambda c, i: (c, 0, 0)),
        ),
        compiler_params=pltpu.CompilerParams(
            dimension_semantics=(core_sem, pltpu.ARBITRARY),
            vmem_limit_bytes=vmem_limit_bytes,
        ),
    )(precedence, y)

    # Final cross-lane collapse and divide-by-batch (tiny; done once).
    return jnp.sum(partials) / jnp.float32(B)


def ssl_loss_ref(precedence, y):
    batch_size = precedence.shape[0]
    return jnp.sum(-y * jnp.log(precedence) - (1.0 - y) * jnp.log(1.0 - precedence)) / batch_size


if __name__ == "__main__":
    key = jax.random.PRNGKey(0)
    kp, ky = jax.random.split(key)

    # 1) Small shape consistent with the module: (batch, features), single block.
    B, D = 16, 128
    p1 = jax.random.uniform(kp, (B, D), dtype=jnp.float32, minval=0.05, maxval=0.95)
    y1 = jax.random.bernoulli(ky, p=0.5, shape=(B, D)).astype(jnp.float32)
    out1 = jax.block_until_ready(ssl_loss(p1, y1))
    ref1 = ssl_loss_ref(p1, y1)
    assert jnp.allclose(out1, ref1, rtol=1e-5, atol=1e-5), (out1, ref1)

    # 2) Ragged batch (B not a multiple of the tile) -> single tail-path block.
    B2 = 13
    p2 = jax.random.uniform(kp, (B2, D), dtype=jnp.float32, minval=0.05, maxval=0.95)
    y2 = jax.random.bernoulli(ky, p=0.5, shape=(B2, D)).astype(jnp.float32)
    out2 = jax.block_until_ready(ssl_loss(p2, y2))
    ref2 = ssl_loss_ref(p2, y2)
    assert jnp.allclose(out2, ref2, rtol=1e-5, atol=1e-5), (out2, ref2)

    # 3) Multi-block reduction + ragged last block (small VMEM budget forces
    #    several grid steps: fast path, fast path, tail path).
    B3 = 1200
    p3 = jax.random.uniform(kp, (B3, D), dtype=jnp.float32, minval=0.05, maxval=0.95)
    y3 = jax.random.bernoulli(ky, p=0.5, shape=(B3, D)).astype(jnp.float32)
    out3 = jax.block_until_ready(ssl_loss(p3, y3, vmem_budget_bytes=1 << 20))
    ref3 = ssl_loss_ref(p3, y3)
    assert jnp.allclose(out3, ref3, rtol=1e-4, atol=1e-4), (out3, ref3)

    # 4) Hard 0/1 labels shipped as int8 (less HBM traffic) + one-log path.
    B4 = 40
    p4 = jax.random.uniform(kp, (B4, D), dtype=jnp.float32, minval=0.05, maxval=0.95)
    y4i = jax.random.bernoulli(ky, p=0.5, shape=(B4, D)).astype(jnp.int8)
    out4 = jax.block_until_ready(ssl_loss(p4, y4i, hard_labels=True))
    ref4 = ssl_loss_ref(p4, y4i.astype(jnp.float32))
    assert jnp.allclose(out4, ref4, rtol=1e-5, atol=1e-5), (out4, ref4)

    print("KERNEL_OK")
</pallas_src>

<mosaic_0001>
module attributes {stable_mosaic.version = 11 : i64} {
  func.func @_ssl_loss_kernel(%arg0: i32, %arg1: i32, %arg2: memref<16x128xf32, #tpu.memory_space<vmem>>, %arg3: memref<16x128xf32, #tpu.memory_space<vmem>>, %arg4: memref<1x8x128xf32, #tpu.memory_space<vmem>>) attributes {dimension_semantics = [#tpu.dimension_semantics<arbitrary>, #tpu.dimension_semantics<arbitrary>], iteration_bounds = array<i64: 1, 1>, scalar_prefetch = 0 : i64, scratch_operands = 0 : i64, tpu.core_type = #tpu.core_type<tc>, window_params = [{transform_indices = @transform_0, window_bounds = array<i64: 16, 128>}, {transform_indices = @transform_1, window_bounds = array<i64: 16, 128>}, {transform_indices = @transform_2, window_bounds = array<i64: 1, 8, 128>}]} {
    %c0_i32 = arith.constant 0 : i32
    %0 = arith.cmpi eq, %arg1, %c0_i32 : i32
    %1 = arith.extui %0 : i1 to i32
    %c0_i32_0 = arith.constant 0 : i32
    %2 = arith.cmpi ne, %1, %c0_i32_0 : i32
    scf.if %2 {
      %cst = arith.constant 0.000000e+00 : f32
      %14 = vector.broadcast %cst : f32 to vector<8x128xf32>
      %c0 = arith.constant 0 : index
      %c0_7 = arith.constant 0 : index
      %c0_8 = arith.constant 0 : index
      %15 = vector.load %arg4[%c0, %c0_7, %c0_8] : memref<1x8x128xf32, #tpu.memory_space<vmem>>, vector<1x8x128xf32>
      %16 = vector.shape_cast %15 : vector<1x8x128xf32> to vector<8x128xf32>
      %17 = vector.shape_cast %14 : vector<8x128xf32> to vector<1x8x128xf32>
      tpu.vector_store %arg4[%c0, %c0_7, %c0_8], %17 {strides = array<i32>} : memref<1x8x128xf32, #tpu.memory_space<vmem>>, vector<1x8x128xf32>,
    } else {
    }
    %c1_i32 = arith.constant 1 : i32
    %3 = arith.muli %arg0, %c1_i32 : i32
    %4 = arith.addi %3, %arg1 : i32
    %c16_i32 = arith.constant 16 : i32
    %5 = arith.muli %4, %c16_i32 : i32
    %c16_i32_1 = arith.constant 16 : i32
    %6 = arith.addi %5, %c16_i32_1 : i32
    %c16_i32_2 = arith.constant 16 : i32
    %7 = arith.cmpi sle, %6, %c16_i32_2 : i32
    %8 = arith.extui %7 : i1 to i32
    %c0_i32_3 = arith.constant 0 : i32
    %9 = arith.cmpi ne, %8, %c0_i32_3 : i32
    scf.if %9 {
      %cst = arith.constant 0.000000e+00 : f32
      %14 = vector.broadcast %cst : f32 to vector<8x128xf32>
      %c0_i32_7 = arith.constant 0 : i32
      %c16_i32_8 = arith.constant 16 : i32
      %15 = arith.muli %c0_i32_7, %c16_i32_8 : i32
      %16 = tpu.assume_multiple %15, 16 : i32
      %17 = arith.index_cast %16 : i32 to index
      %c0 = arith.constant 0 : index
      %18 = vector.load %arg2[%17, %c0] : memref<16x128xf32, #tpu.memory_space<vmem>>, vector<16x128xf32>
      %19 = arith.index_cast %16 : i32 to index
      %c0_9 = arith.constant 0 : index
      %20 = vector.load %arg3[%19, %c0_9] : memref<16x128xf32, #tpu.memory_space<vmem>>, vector<16x128xf32>
      %cst_10 = arith.constant 0.000000e+00 : f32
      %21 = vector.broadcast %cst_10 : f32 to vector<16x128xf32>
      %22 = arith.subf %21, %20 : vector<16x128xf32>
      %23 = math.log %18 : vector<16x128xf32>
      %24 = arith.mulf %22, %23 : vector<16x128xf32>
      %cst_11 = arith.constant 1.000000e+00 : f32
      %25 = vector.broadcast %cst_11 : f32 to vector<16x128xf32>
      %26 = arith.subf %25, %20 : vector<16x128xf32>
      %cst_12 = arith.constant 1.000000e+00 : f32
      %27 = vector.broadcast %cst_12 : f32 to vector<16x128xf32>
      %28 = arith.subf %27, %18 : vector<16x128xf32>
      %29 = math.log %28 : vector<16x128xf32>
      %30 = arith.mulf %26, %29 : vector<16x128xf32>
      %31 = arith.subf %24, %30 : vector<16x128xf32>
      %32 = vector.shape_cast %31 : vector<16x128xf32> to vector<2x8x128xf32>
      %cst_13 = arith.constant dense<0.000000e+00> : vector<8x128xf32>
      %33 = vector.multi_reduction <add>, %32, %cst_13 [0] : vector<2x8x128xf32> to vector<8x128xf32>
      %34 = arith.addf %14, %33 : vector<8x128xf32>
      %c1_i32_14 = arith.constant 1 : i32
      %c0_15 = arith.constant 0 : index
      %c0_16 = arith.constant 0 : index
      %c0_17 = arith.constant 0 : index
      %35 = vector.load %arg4[%c0_15, %c0_16, %c0_17] : memref<1x8x128xf32, #tpu.memory_space<vmem>>, vector<1x8x128xf32>
      %36 = vector.shape_cast %35 : vector<1x8x128xf32> to vector<8x128xf32>
      %37 = arith.addf %36, %34 : vector<8x128xf32>
      %c0_18 = arith.constant 0 : index
      %c0_19 = arith.constant 0 : index
      %c0_20 = arith.constant 0 : index
      %38 = vector.load %arg4[%c0_18, %c0_19, %c0_20] : memref<1x8x128xf32, #tpu.memory_space<vmem>>, vector<1x8x128xf32>
      %39 = vector.shape_cast %38 : vector<1x8x128xf32> to vector<8x128xf32>
      %40 = vector.shape_cast %37 : vector<8x128xf32> to vector<1x8x128xf32>
      tpu.vector_store %arg4[%c0_18, %c0_19, %c0_20], %40 {strides = array<i32>} : memref<1x8x128xf32, #tpu.memory_space<vmem>>, vector<1x8x128xf32>,
    } else {
    }
    %c16_i32_4 = arith.constant 16 : i32
    %10 = arith.addi %5, %c16_i32_4 : i32
    %c16_i32_5 = arith.constant 16 : i32
    %11 = arith.cmpi sgt, %10, %c16_i32_5 : i32
    %12 = arith.extui %11 : i1 to i32
    %c0_i32_6 = arith.constant 0 : i32
    %13 = arith.cmpi ne, %12, %c0_i32_6 : i32
    scf.if %13 {
      %cst = arith.constant 0.000000e+00 : f32
      %14 = vector.broadcast %cst : f32 to vector<8x128xf32>
      %c0_i32_7 = arith.constant 0 : i32
      %c16_i32_8 = arith.constant 16 : i32
      %15 = arith.muli %c0_i32_7, %c16_i32_8 : i32
      %16 = tpu.assume_multiple %15, 16 : i32
      %17 = arith.index_cast %16 : i32 to index
      %c0 = arith.constant 0 : index
      %18 = vector.load %arg2[%17, %c0] : memref<16x128xf32, #tpu.memory_space<vmem>>, vector<16x128xf32>
      %19 = arith.index_cast %16 : i32 to index
      %c0_9 = arith.constant 0 : index
      %20 = vector.load %arg3[%19, %c0_9] : memref<16x128xf32, #tpu.memory_space<vmem>>, vector<16x128xf32>
      %cst_10 = arith.constant 0.000000e+00 : f32
      %21 = vector.broadcast %cst_10 : f32 to vector<16x128xf32>
      %22 = arith.subf %21, %20 : vector<16x128xf32>
      %23 = math.log %18 : vector<16x128xf32>
      %24 = arith.mulf %22, %23 : vector<16x128xf32>
      %cst_11 = arith.constant 1.000000e+00 : f32
      %25 = vector.broadcast %cst_11 : f32 to vector<16x128xf32>
      %26 = arith.subf %25, %20 : vector<16x128xf32>
      %cst_12 = arith.constant 1.000000e+00 : f32
      %27 = vector.broadcast %cst_12 : f32 to vector<16x128xf32>
      %28 = arith.subf %27, %18 : vector<16x128xf32>
      %29 = math.log %28 : vector<16x128xf32>
      %30 = arith.mulf %26, %29 : vector<16x128xf32>
      %31 = arith.subf %24, %30 : vector<16x128xf32>
      %32 = arith.addi %5, %16 : i32
      %33 = tpu.iota {dimensions = array<i32: 0>} : vector<16x128xi32>
      %34 = vector.broadcast %32 : i32 to vector<16x128xi32>
      %35 = arith.addi %34, %33 : vector<16x128xi32>
      %c16_i32_13 = arith.constant 16 : i32
      %36 = vector.broadcast %c16_i32_13 : i32 to vector<16x128xi32>
      %37 = arith.cmpi slt, %35, %36 : vector<16x128xi32>
      %cst_14 = arith.constant 0.000000e+00 : f32
      %38 = vector.broadcast %cst_14 : f32 to vector<16x128xf32>
      %39 = arith.select %37, %31, %38 : vector<16x128xi1>, vector<16x128xf32>
      %40 = vector.shape_cast %39 : vector<16x128xf32> to vector<2x8x128xf32>
      %cst_15 = arith.constant dense<0.000000e+00> : vector<8x128xf32>
      %41 = vector.multi_reduction <add>, %40, %cst_15 [0] : vector<2x8x128xf32> to vector<8x128xf32>
      %42 = arith.addf %14, %41 : vector<8x128xf32>
      %c1_i32_16 = arith.constant 1 : i32
      %c0_17 = arith.constant 0 : index
      %c0_18 = arith.constant 0 : index
      %c0_19 = arith.constant 0 : index
      %43 = vector.load %arg4[%c0_17, %c0_18, %c0_19] : memref<1x8x128xf32, #tpu.memory_space<vmem>>, vector<1x8x128xf32>
      %44 = vector.shape_cast %43 : vector<1x8x128xf32> to vector<8x128xf32>
      %45 = arith.addf %44, %42 : vector<8x128xf32>
      %c0_20 = arith.constant 0 : index
      %c0_21 = arith.constant 0 : index
      %c0_22 = arith.constant 0 : index
      %46 = vector.load %arg4[%c0_20, %c0_21, %c0_22] : memref<1x8x128xf32, #tpu.memory_space<vmem>>, vector<1x8x128xf32>
      %47 = vector.shape_cast %46 : vector<1x8x128xf32> to vector<8x128xf32>
      %48 = vector.shape_cast %45 : vector<8x128xf32> to vector<1x8x128xf32>
      tpu.vector_store %arg4[%c0_20, %c0_21, %c0_22], %48 {strides = array<i32>} : memref<1x8x128xf32, #tpu.memory_space<vmem>>, vector<1x8x128xf32>,
    } else {
    }
    return
  }
  func.func @transform_0(%arg0: i32, %arg1: i32) -> (i32, i32) {
    %c1_i32 = arith.constant 1 : i32
    %0 = arith.muli %arg0, %c1_i32 : i32
    %c0_i32 = arith.constant 0 : i32
    %1 = arith.subi %c0_i32, %0 : i32
    %c0_i32_0 = arith.constant 0 : i32
    %2 = arith.minsi %1, %c0_i32_0 : i32
    %c0_i32_1 = arith.constant 0 : i32
    %3 = arith.maxsi %2, %c0_i32_1 : i32
    %4 = arith.minsi %arg1, %3 : i32
    %5 = arith.addi %0, %4 : i32
    %c0_i32_2 = arith.constant 0 : i32
    %6 = arith.minsi %5, %c0_i32_2 : i32
    %c0_i32_3 = arith.constant 0 : i32
    %c0_i32_4 = arith.constant 0 : i32
    return %6, %c0_i32_3 : i32, i32
  }
  func.func @transform_1(%arg0: i32, %arg1: i32) -> (i32, i32) {
    %c1_i32 = arith.constant 1 : i32
    %0 = arith.muli %arg0, %c1_i32 : i32
    %c0_i32 = arith.constant 0 : i32
    %1 = arith.subi %c0_i32, %0 : i32
    %c0_i32_0 = arith.constant 0 : i32
    %2 = arith.minsi %1, %c0_i32_0 : i32
    %c0_i32_1 = arith.constant 0 : i32
    %3 = arith.maxsi %2, %c0_i32_1 : i32
    %4 = arith.minsi %arg1, %3 : i32
    %5 = arith.addi %0, %4 : i32
    %c0_i32_2 = arith.constant 0 : i32
    %6 = arith.minsi %5, %c0_i32_2 : i32
    %c0_i32_3 = arith.constant 0 : i32
    %c0_i32_4 = arith.constant 0 : i32
    return %6, %c0_i32_3 : i32, i32
  }
  func.func @transform_2(%arg0: i32, %arg1: i32) -> (i32, i32, i32) {
    %c0_i32 = arith.constant 0 : i32
    %c0_i32_0 = arith.constant 0 : i32
    %c0_i32_1 = arith.constant 0 : i32
    return %arg0, %c0_i32, %c0_i32_0 : i32, i32, i32
  }
}

</mosaic_0001>

<bundles_post_ra>
// kernel: tpu_custom_call.1
= control target key start
LH: loop header
LB: loop body
LE: loop exit
PB: predicated region body
PF: predicated region fallthrough
CT: control target
= control target key end

     0   :  { %7 = vsyncpa [#allocation3], 0  ;;  %s335_s0 = inlined_call_operand.hbm [shape: f32[16,128], index: 0, kind: input, shape index: {}]   ;;  %s336_s1 = inlined_call_operand.hbm [shape: f32[16,128], index: 1, kind: input, shape index: {}]   ;;  %s337_s2 = inlined_call_operand.hbm [shape: f32[1,8,128], index: 2, kind: output, shape index: {}]  }
   0x1   :  { %8 = vsyncpa [#allocation6], 0 }
   0x2   :  { %9 = vsyncpa [#allocation4], 0  ;;  %s279_s9 = smov [#allocation2]   ;;  %s207_s13 = scalar_lea.hbm %s335_s0, 256 }
   0x3   :  { %s28_s10 = sshll.u32 %s279_s9, 4  ;;  %p208_p0 = scmp.ne.s32.totalorder %s335_s0, %s207_s13  ;;  %s29_s10 = int_to_ptr.vmem [resolvable:$true] %s28_s10 }
   0x4   :  { %p211_p1 = scmp.lt.u32.totalorder %s207_s13, %s335_s0 }
   0x6   :  { %p213_p2 = pnand %p211_p1, %p208_p0 }
   0x8   :  { %216 = shalt.err (!%p213_p2)
}
   0x9   :  { %s217_s18 = scalar_lea.vmem %s29_s10, 256  ;;  %p222_p4 = scmp.lt.s32.totalorder %s29_s10, %s29_s10 }
   0xa   :  { %p218_p3 = scmp.ne.s32.totalorder %s29_s10, %s217_s18  ;;  %p223_p5 = scmp.lt.s32.totalorder %s217_s18, %s217_s18 }
   0xc   :  { %p224_p6 = por %p223_p5, %p222_p4 }
   0xe   :  { %p225_p7 = pnand %p224_p6, %p218_p3 }
  0x10   :  { %228 = shalt.err (!%p225_p7)
}
  0x11   :  { %s280_s19 = smov 128   ;;  %s281_s20 = smov 8  }
  0x12   :  { %34 = dma.hbm_to_vmem [thread:$0]  %s335_s0, 256, %s29_s10, [#allocation3], %s280_s19, %s280_s19, %s281_s20  }
  0x13   :  { %s282_s23 = smov [#allocation5]   ;;  %s229_s27 = scalar_lea.hbm %s336_s1, 256 }
  0x14   :  { %s53_s24 = sshll.u32 %s282_s23, 4  ;;  %p230_p8 = scmp.ne.s32.totalorder %s336_s1, %s229_s27  ;;  %s54_s24 = int_to_ptr.vmem [resolvable:$true] %s53_s24 }
  0x15   :  { %p233_p9 = scmp.lt.u32.totalorder %s229_s27, %s336_s1 }
  0x17   :  { %p235_p10 = pnand %p233_p9, %p230_p8 }
  0x19   :  { %238 = shalt.err (!%p235_p10)
}
  0x1a   :  { %s239_s4 = scalar_lea.vmem %s54_s24, 256  ;;  %p244_p12 = scmp.lt.s32.totalorder %s54_s24, %s54_s24 }
  0x1b   :  { %p240_p11 = scmp.ne.s32.totalorder %s54_s24, %s239_s4  ;;  %p245_p13 = scmp.lt.s32.totalorder %s239_s4, %s239_s4 }
  0x1d   :  { %p246_p0 = por %p245_p13, %p244_p12 }
  0x1f   :  { %p247_p1 = pnand %p246_p0, %p240_p11 }
  0x21   :  { %250 = shalt.err (!%p247_p1)
}
  0x22   :  { %59 = dma.hbm_to_vmem [thread:$0]  %s336_s1, 256, %s54_s24, [#allocation6], %s280_s19, %s280_s19, %s281_s20  }
  0x23   :  { %273 = dma.done.wait [#allocation3], 256  }
  0x24   :  { %274 = vsyncadd [#allocation3], 4294967040 }
  0x25   :  { %275 = dma.done.wait [#allocation6], 256  }
  0x26   :  { %276 = vsyncadd [#allocation6], 4294967040  ;;  %v100_v0 = vld [vmem:[#allocation2] sm:$0xff]  ;;  %v101_v1 = vld [vmem:[#allocation2 + $0x8] sm:$0xff]  ;;  %s283_s1 = smov [#allocation7]  }
  0x27   :  { %199 = vlog2.f32 %v100_v0  ;;  %v114_v2 = vsub.f32 1.0, %v100_v0  ;;  %v115_v3 = vsub.f32 1.0, %v101_v1  ;;  %v102_v4 = vld [vmem:[#allocation5] sm:$0xff]  ;;  %v103_v5 = vld [vmem:[#allocation5 + $0x8] sm:$0xff]  ;;  %s179_s6 = sshll.u32 %s283_s1, 4  ;;  %s180_s6 = int_to_ptr.vmem [resolvable:$true] %s179_s6 }
  0x28   :  { %201 = vlog2.f32 %v101_v1  ;;  %v104_v6 = vsub.f32 0.0, %v102_v4  ;;  %v105_v8 = vsub.f32 0.0, %v103_v5  ;;  %v112_v11 = vsub.f32 1.0, %v102_v4  ;;  %s251_s7 = scalar_lea.vmem %s180_s6, 128  ;;  %p256_p3 = scmp.lt.s32.totalorder %s180_s6, %s180_s6 }
  0x29   :  { %203 = vlog2.f32 %v114_v2  ;;  %v113_v14 = vsub.f32 1.0, %v103_v5  ;;  %p252_p2 = scmp.ne.s32.totalorder %s180_s6, %s251_s7  ;;  %p257_p4 = scmp.lt.s32.totalorder %s251_s7, %s251_s7 }
  0x2a   :  { %205 = vlog2.f32 %v115_v3 }
  0x2b   :  { %p258_p5 = por %p257_p4, %p256_p3 }
  0x2d   :  { %p259_p6 = pnand %p258_p5, %p252_p2 }
  0x31   :  { %v200_v7 = vpop.eup %199 }
  0x32   :  { %v202_v9 = vpop.eup %201  ;;  %v107_v10 = vmul.f32 0.6931472, %v200_v7 }
  0x33   :  { %v204_v12 = vpop.eup %203  ;;  %v109_v13 = vmul.f32 0.6931472, %v202_v9 }
  0x34   :  { %v206_v15 = vpop.eup %205  ;;  %v110_v16 = vmul.f32 %v107_v10, %v104_v6  ;;  %v117_v17 = vmul.f32 0.6931472, %v204_v12 }
  0x35   :  { %v111_v18 = vmul.f32 %v109_v13, %v105_v8  ;;  %v119_v19 = vmul.f32 0.6931472, %v206_v15 }
  0x36   :  { %v120_v20 = vmul.f32 %v117_v17, %v112_v11 }
  0x37   :  { %v121_v21 = vmul.f32 %v119_v19, %v113_v14 }
  0x38   :  { %v122_v22 = vsub.f32 %v110_v16, %v120_v20 }
  0x39   :  { %v123_v23 = vsub.f32 %v111_v18, %v121_v21 }
  0x3b   :  { %v124_v24 = vadd.f32 %v123_v23, %v122_v22 }
  0x3d   :  { %128 = vst [vmem:[#allocation7] sm:$0xff] %v124_v24 }
  0x3e   :  { %262 = shalt.err (!%p259_p6)
}
  0x3f   :  { %s263_s10 = scalar_lea.hbm %s337_s2, 128 }
  0x40   :  { %p264_p7 = scmp.ne.s32.totalorder %s337_s2, %s263_s10  ;;  %p267_p8 = scmp.lt.u32.totalorder %s263_s10, %s337_s2 }
  0x42   :  { %p269_p9 = pnand %p267_p8, %p264_p7 }
  0x44   :  { %272 = shalt.err (!%p269_p9)
}
  0x45   :  { %182 = dma.vmem_to_hbm [thread:$0]  %s180_s6, 128, %s337_s2, [#allocation4]  }
  0x46   :  { %277 = dma.done.wait [#allocation4], 128  }
  0x47   :  { %278 = vsyncadd [#allocation4], 4294967168 }
  0x48   :  { %186 = vsyncpa [#allocation3], 1 }
  0x49   :  { %187 = vsyncpa [#allocation6], 1 }
  0x4a   :  { %188 = vsyncpa [#allocation4], 1 }

</bundles_post_ra>
